<compile_context>
chip_gen: v7x
topology: tpu7x:2x2x1
jax: 0.10.0
libtpu: 0.0.40
codegen_flags: <defaults>
</compile_context>

<pallas_src>
import functools

import jax
import jax.numpy as jnp
from jax.experimental import pallas as pl
from jax.experimental.pallas import tpu as pltpu

BN_EPS = 1e-5
H1, H2 = 400, 300          # logical hidden sizes (PyTorch module)
H1P, H2P = 512, 384        # lane-aligned padded hidden sizes
VMEM_LIMIT = 32 * 1024 * 1024


# ----------------------------------------------------------------------------
# Shared kernel tail: BN-normalize (given mean/invstd) + relu + fc2 + fc3.
# ----------------------------------------------------------------------------
def _critic_tail(h1, action, mean, invstd, vecs512, w2_ref, vecs384, out_ref):
    gamma = vecs512[0:1, :]                       # [1, H1P]
    beta = vecs512[1:2, :]                        # [1, H1P]
    h1n = jnp.maximum((h1 - mean) * invstd * gamma + beta, 0.0)   # f32 [B, H1P]

    n_act = action.shape[1]
    # fc2 on the MXU in bf16, f32 accumulation. State half + action half are two
    # dots against slices of the same packed W2 slab (action rows start at H1P).
    h2 = jnp.dot(h1n.astype(jnp.bfloat16), w2_ref[:H1P, :],
                 preferred_element_type=jnp.float32)              # [B, H2P]
    h2 = h2 + jnp.dot(action.astype(jnp.bfloat16),
                      w2_ref[H1P:H1P + n_act, :],
                      preferred_element_type=jnp.float32)
    h2 = jnp.maximum(h2 + vecs384[0:1, :], 0.0)                   # + b2 (zero-padded)

    # fc3 as VPU multiply + lane reduce (w3 stored as a [1, H2P] row, pad = 0).
    w3row = vecs384[1:2, :]                       # [1, H2P]
    b3 = vecs384[2:3, :1]                         # [1, 1]
    out_ref[...] = jnp.sum(h2 * w3row, axis=-1, keepdims=True) + b3


# ----------------------------------------------------------------------------
# Single-shot kernel: whole batch resident, BN stats computed in-kernel
# (centered variance form).
# ----------------------------------------------------------------------------
def critic_kernel(state_ref, action_ref, w1_ref, w2_ref,
                  vecs512_ref, vecs384_ref, out_ref):
    h1 = jnp.dot(state_ref[...].astype(jnp.bfloat16), w1_ref[...],
                 preferred_element_type=jnp.float32)              # f32 [B, H1P]
    mean = jnp.mean(h1, axis=0, keepdims=True)
    centered = h1 - mean
    var = jnp.mean(centered * centered, axis=0, keepdims=True)    # biased variance
    invstd = jax.lax.rsqrt(var + BN_EPS)
    _critic_tail(h1, action_ref[...], mean, invstd,
                 vecs512_ref[...], w2_ref, vecs384_ref[...], out_ref)


# ----------------------------------------------------------------------------
# Batch-tiled path, pass 1: per-core partial BN batch statistics.
# Grid = (ncores, nb_per_core); core axis "parallel" (both v7x TCs), batch axis
# "arbitrary" (resident accumulator). Each core owns an 8-sublane-aligned block:
# row 0 = sum, row 1 = sum of squares, rows 2..7 unused (full-vreg updates).
# ----------------------------------------------------------------------------
def bn_stats_kernel(state_ref, w1_ref, stats_ref):
    i = pl.program_id(1)

    @pl.when(i == 0)
    def _init():
        stats_ref[...] = jnp.zeros_like(stats_ref)

    h1 = jnp.dot(state_ref[...].astype(jnp.bfloat16), w1_ref[...],
                 preferred_element_type=jnp.float32)              # [TB, H1P]
    upd = jnp.concatenate(
        [jnp.sum(h1, axis=0, keepdims=True),
         jnp.sum(h1 * h1, axis=0, keepdims=True),
         jnp.zeros((6, H1P), jnp.float32)], axis=0)               # [8, H1P]
    stats_ref[...] += upd


# ----------------------------------------------------------------------------
# Batch-tiled path, pass 2: combine partial stats, normalize, fc2, fc3.
# Independent batch tiles -> "parallel" (megacore on v7x). `batch` is the TRUE
# (unpadded) batch size; zero-padded rows contribute exactly 0 to sum/sumsq.
# ----------------------------------------------------------------------------
def critic_tile_kernel(state_ref, action_ref, stats_ref, w1_ref, w2_ref,
                       vecs512_ref, vecs384_ref, out_ref, *, batch):
    h1 = jnp.dot(state_ref[...].astype(jnp.bfloat16), w1_ref[...],
                 preferred_element_type=jnp.float32)
    s = stats_ref[...]                                            # [8*ncores, H1P]
    if s.shape[0] == 16:          # two per-core partials -> combine
        ssum = s[0:1, :] + s[8:9, :]
        ssq = s[1:2, :] + s[9:10, :]
    else:                         # single core wrote rows 0/1
        ssum = s[0:1, :]
        ssq = s[1:2, :]
    inv_n = 1.0 / float(batch)
    mean = ssum * inv_n
    var = jnp.maximum(ssq * inv_n - mean * mean, 0.0)             # biased variance
    invstd = jax.lax.rsqrt(var + BN_EPS)
    _critic_tail(h1, action_ref[...], mean, invstd,
                 vecs512_ref[...], w2_ref, vecs384_ref[...], out_ref)


# ----------------------------------------------------------------------------
# Wrapper
# ----------------------------------------------------------------------------
@functools.partial(jax.jit, static_argnames=("batch_tile", "single_shot_max_b"))
def critic_forward(state, action, packed, *, batch_tile=512, single_shot_max_b=2048):
    B, S = state.shape
    A = action.shape[1]
    w1 = packed["w1"]                            # [S, H1P]          bf16
    w2 = packed["w2"]                            # [H1P+pad, H2P]    bf16 (state+action rows)
    vecs512 = packed["vecs512"]                  # [2, H1P]          f32 (gamma, beta)
    vecs384 = packed["vecs384"]                  # [3, H2P]          f32 (b2, w3 row, b3)
    w2_rows = w2.shape[0]
    vmem = pl.BlockSpec(memory_space=pltpu.MemorySpace.VMEM)

    # Small / moderate batch: whole batch resident, single program, centered BN.
    if B <= max(single_shot_max_b, batch_tile):
        return pl.pallas_call(
            critic_kernel,
            out_shape=jax.ShapeDtypeStruct((B, 1), jnp.float32),
            in_specs=[vmem] * 6,
            out_specs=vmem,
            compiler_params=pltpu.CompilerParams(vmem_limit_bytes=VMEM_LIMIT),
        )(state, action, w1, w2, vecs512, vecs384)

    # Large batch: two-pass tiled path. Pad to a tile multiple if needed (exact:
    # b1 is dropped, so zero state rows give h1 == 0 and contribute nothing to
    # the statistics; the finalize divides by the true B).
    b_pad = ((B + batch_tile - 1) // batch_tile) * batch_tile
    if b_pad != B:
        state = jnp.pad(state, ((0, b_pad - B), (0, 0)))
        action = jnp.pad(action, ((0, b_pad - B), (0, 0)))

    nb = b_pad // batch_tile
    ncores = 2 if nb % 2 == 0 else 1
    npc = nb // ncores                            # tiles per core

    # Pass 1: per-core partial (sum, sumsq) over the batch.
    stats = pl.pallas_call(
        bn_stats_kernel,
        out_shape=jax.ShapeDtypeStruct((8 * ncores, H1P), jnp.float32),
        grid=(ncores, npc),
        in_specs=[pl.BlockSpec((batch_tile, S), lambda c, i: (c * npc + i, 0)),
                  pl.BlockSpec((S, H1P), lambda c, i: (0, 0))],
        out_specs=pl.BlockSpec((8, H1P), lambda c, i: (c, 0)),
        compiler_params=pltpu.CompilerParams(
            dimension_semantics=("parallel", "arbitrary"),
            vmem_limit_bytes=VMEM_LIMIT),
    )(state, w1)

    # Pass 2: independent batch tiles -> parallel (megacore on v7x).
    out = pl.pallas_call(
        functools.partial(critic_tile_kernel, batch=B),
        out_shape=jax.ShapeDtypeStruct((b_pad, 1), jnp.float32),
        grid=(nb,),
        in_specs=[pl.BlockSpec((batch_tile, S), lambda i: (i, 0)),
                  pl.BlockSpec((batch_tile, A), lambda i: (i, 0)),
                  pl.BlockSpec((8 * ncores, H1P), lambda i: (0, 0)),
                  pl.BlockSpec((S, H1P), lambda i: (0, 0)),
                  pl.BlockSpec((w2_rows, H2P), lambda i: (0, 0)),
                  pl.BlockSpec((2, H1P), lambda i: (0, 0)),
                  pl.BlockSpec((3, H2P), lambda i: (0, 0))],
        out_specs=pl.BlockSpec((batch_tile, 1), lambda i: (i, 0)),
        compiler_params=pltpu.CompilerParams(
            dimension_semantics=("parallel",),
            vmem_limit_bytes=VMEM_LIMIT),
    )(state, action, stats, w1, w2, vecs512, vecs384)

    return out[:B] if b_pad != B else out


# ----------------------------------------------------------------------------
# Parameter construction
# ----------------------------------------------------------------------------
def init_params(key, state_size, action_size):
    """Logical (unpadded, f32) params mirroring Critic.__init__/reset_parameters."""
    ks = jax.random.split(key, 6)

    def unif(k, shape, lim):
        return jax.random.uniform(k, shape, jnp.float32, -lim, lim)

    lim1 = 1.0 / jnp.sqrt(float(H1))
    lim2 = 1.0 / jnp.sqrt(float(H2))
    blim1 = 1.0 / jnp.sqrt(float(state_size))
    blim2 = 1.0 / jnp.sqrt(float(H1 + action_size))
    blim3 = 1.0 / jnp.sqrt(float(H2))

    w2_full = unif(ks[2], (H1 + action_size, H2), lim2)   # [in, out] layout
    return {
        "w1": unif(ks[0], (state_size, H1), lim1),        # [S, 400]
        "b1": unif(ks[1], (1, H1), blim1),                # used by reference only
        "gamma": jnp.ones((1, H1), jnp.float32),
        "beta": jnp.zeros((1, H1), jnp.float32),
        "w2s": w2_full[:H1, :],                           # [400, 300]
        "w2a": w2_full[H1:, :],                           # [A, 300]
        "b2": unif(ks[3], (1, H2), blim2),
        "w3": unif(ks[4], (H2, 1), 0.003),
        "b3": unif(ks[5], (1, 1), blim3),
    }


def pack_params(params, state_size, action_size):
    """One-time packing into lane-aligned, kernel-ready operands."""
    a_pad = -(-action_size // 8) * 8

    w1 = jnp.zeros((state_size, H1P), jnp.float32).at[:, :H1].set(params["w1"])

    # W2 slab: rows 0..H1P-1 = state part (padded from 400), rows H1P..H1P+A-1 =
    # action part, remaining rows zero (sublane-aligned total).
    w2 = jnp.zeros((H1P + a_pad, H2P), jnp.float32)
    w2 = w2.at[:H1, :H2].set(params["w2s"])
    w2 = w2.at[H1P:H1P + action_size, :H2].set(params["w2a"])

    vecs512 = jnp.zeros((2, H1P), jnp.float32)
    vecs512 = vecs512.at[0, :H1].set(params["gamma"][0])
    vecs512 = vecs512.at[1, :H1].set(params["beta"][0])

    vecs384 = jnp.zeros((3, H2P), jnp.float32)
    vecs384 = vecs384.at[0, :H2].set(params["b2"][0])       # row 0: b2
    vecs384 = vecs384.at[1, :H2].set(params["w3"][:, 0])    # row 1: w3 as a row
    vecs384 = vecs384.at[2, :].set(params["b3"][0, 0])      # row 2: b3 broadcast

    return {
        "w1": w1.astype(jnp.bfloat16),
        "w2": w2.astype(jnp.bfloat16),
        "vecs512": vecs512,
        "vecs384": vecs384,
    }


# ----------------------------------------------------------------------------
# Pure-JAX f32 reference (faithful to the PyTorch module, including b1).
# ----------------------------------------------------------------------------
def reference_forward(state, action, params):
    h1 = state @ params["w1"] + params["b1"]
    mean = jnp.mean(h1, axis=0, keepdims=True)
    var = jnp.mean((h1 - mean) ** 2, axis=0, keepdims=True)
    h1 = (h1 - mean) / jnp.sqrt(var + BN_EPS) * params["gamma"] + params["beta"]
    h1 = jnp.maximum(h1, 0.0)
    cat = jnp.concatenate([h1, action], axis=1)
    w2 = jnp.concatenate([params["w2s"], params["w2a"]], axis=0)
    h2 = jnp.maximum(cat @ w2 + params["b2"], 0.0)
    return h2 @ params["w3"] + params["b3"]


if __name__ == "__main__":
    state_size, action_size = 32, 4
    key = jax.random.PRNGKey(0)
    kp, k1, k2, k3, k4, k5, k6 = jax.random.split(key, 7)

    params = init_params(kp, state_size, action_size)
    packed = pack_params(params, state_size, action_size)

    def run_and_check(b, ks, ka, **kw):
        s = jax.random.normal(ks, (b, state_size), jnp.float32)
        a = jax.random.normal(ka, (b, action_size), jnp.float32)
        out = critic_forward(s, a, packed, **kw)
        jax.block_until_ready(out)
        ref = reference_forward(s, a, params)
        assert out.shape == (b, 1)
        # bf16 MXU operands vs f32 reference -> small, bounded numerical drift.
        err = float(jnp.max(jnp.abs(out - ref)))
        assert jnp.allclose(out, ref, atol=1e-2, rtol=5e-2), f"max abs err {err}"
        return out

    # Small batch -> single-shot whole-batch kernel.
    run_and_check(8, k1, k2)
    # Tiled two-pass path, nb even -> 2-way core-parallel stats pass.
    run_and_check(512, k3, k4, batch_tile=128, single_shot_max_b=0)
    # Tiled two-pass path with batch padding (320 -> 384) and odd tile count.
    run_and_check(320, k5, k6, batch_tile=128, single_shot_max_b=0)

    print("KERNEL_OK")
</pallas_src>

<mosaic_0001>
module attributes {stable_mosaic.version = 11 : i64} {
  func.func @critic_kernel(%arg0: memref<8x32xf32, #tpu.memory_space<vmem>>, %arg1: memref<8x4xf32, #tpu.memory_space<vmem>>, %arg2: memref<32x512xbf16, #tpu.memory_space<vmem>>, %arg3: memref<520x384xbf16, #tpu.memory_space<vmem>>, %arg4: memref<2x512xf32, #tpu.memory_space<vmem>>, %arg5: memref<3x384xf32, #tpu.memory_space<vmem>>, %arg6: memref<8x1xf32, #tpu.memory_space<vmem>>) attributes {dimension_semantics = [], scalar_prefetch = 0 : i64, scratch_operands = 0 : i64, tpu.core_type = #tpu.core_type<tc>} {
    %c0 = arith.constant 0 : index
    %c0_0 = arith.constant 0 : index
    %0 = vector.load %arg0[%c0, %c0_0] : memref<8x32xf32, #tpu.memory_space<vmem>>, vector<8x32xf32>
    %1 = arith.truncf %0 : vector<8x32xf32> to vector<8x32xbf16>
    %c0_1 = arith.constant 0 : index
    %c0_2 = arith.constant 0 : index
    %2 = vector.load %arg2[%c0_1, %c0_2] : memref<32x512xbf16, #tpu.memory_space<vmem>>, vector<32x512xbf16>
    %cst = arith.constant dense<0.000000e+00> : vector<8x512xf32>
    %3 = tpu.matmul %1, %2, %cst {dimension_numbers = #tpu.dot_dimension_numbers<[1], [0], [0], [1], [0, 0, 1, 1], [], []>} : vector<8x32xbf16>, vector<32x512xbf16>, vector<8x512xf32> -> vector<8x512xf32>
    %cst_3 = arith.constant dense<0.000000e+00> : vector<512xf32>
    %4 = vector.multi_reduction <add>, %3, %cst_3 [0] : vector<8x512xf32> to vector<512xf32>
    %5 = vector.shape_cast %4 : vector<512xf32> to vector<1x512xf32>
    %cst_4 = arith.constant 8.000000e+00 : f32
    %6 = vector.broadcast %cst_4 : f32 to vector<1x512xf32>
    %7 = arith.divf %5, %6 : vector<1x512xf32>
    %8 = vector.broadcast %7 : vector<1x512xf32> to vector<8x512xf32>
    %9 = arith.subf %3, %8 : vector<8x512xf32>
    %10 = arith.mulf %9, %9 : vector<8x512xf32>
    %cst_5 = arith.constant dense<0.000000e+00> : vector<512xf32>
    %11 = vector.multi_reduction <add>, %10, %cst_5 [0] : vector<8x512xf32> to vector<512xf32>
    %12 = vector.shape_cast %11 : vector<512xf32> to vector<1x512xf32>
    %cst_6 = arith.constant 8.000000e+00 : f32
    %13 = vector.broadcast %cst_6 : f32 to vector<1x512xf32>
    %14 = arith.divf %12, %13 : vector<1x512xf32>
    %cst_7 = arith.constant 9.99999974E-6 : f32
    %15 = vector.broadcast %cst_7 : f32 to vector<1x512xf32>
    %16 = arith.addf %14, %15 : vector<1x512xf32>
    %17 = math.rsqrt %16 : vector<1x512xf32>
    %c0_8 = arith.constant 0 : index
    %c0_9 = arith.constant 0 : index
    %18 = vector.load %arg1[%c0_8, %c0_9] : memref<8x4xf32, #tpu.memory_space<vmem>>, vector<8x4xf32>
    %c0_10 = arith.constant 0 : index
    %c0_11 = arith.constant 0 : index
    %19 = vector.load %arg4[%c0_10, %c0_11] : memref<2x512xf32, #tpu.memory_space<vmem>>, vector<2x512xf32>
    %c0_12 = arith.constant 0 : index
    %c0_13 = arith.constant 0 : index
    %20 = vector.load %arg5[%c0_12, %c0_13] : memref<3x384xf32, #tpu.memory_space<vmem>>, vector<3x384xf32>
    %21 = vector.extract_strided_slice %19 {offsets = [0, 0], sizes = [1, 512], strides = [1, 1]} : vector<2x512xf32> to vector<1x512xf32>
    %22 = vector.extract_strided_slice %19 {offsets = [1, 0], sizes = [1, 512], strides = [1, 1]} : vector<2x512xf32> to vector<1x512xf32>
    %23 = vector.broadcast %7 : vector<1x512xf32> to vector<8x512xf32>
    %24 = arith.subf %3, %23 : vector<8x512xf32>
    %25 = vector.broadcast %17 : vector<1x512xf32> to vector<8x512xf32>
    %26 = arith.mulf %24, %25 : vector<8x512xf32>
    %27 = vector.broadcast %21 : vector<1x512xf32> to vector<8x512xf32>
    %28 = arith.mulf %26, %27 : vector<8x512xf32>
    %29 = vector.broadcast %22 : vector<1x512xf32> to vector<8x512xf32>
    %30 = arith.addf %28, %29 : vector<8x512xf32>
    %cst_14 = arith.constant 0.000000e+00 : f32
    %31 = vector.broadcast %cst_14 : f32 to vector<8x512xf32>
    %32 = arith.maximumf %30, %31 : vector<8x512xf32>
    %33 = arith.truncf %32 : vector<8x512xf32> to vector<8x512xbf16>
    %c0_15 = arith.constant 0 : index
    %c0_16 = arith.constant 0 : index
    %34 = vector.load %arg3[%c0_15, %c0_16] : memref<520x384xbf16, #tpu.memory_space<vmem>>, vector<512x384xbf16>
    %cst_17 = arith.constant dense<0.000000e+00> : vector<8x384xf32>
    %35 = tpu.matmul %33, %34, %cst_17 {dimension_numbers = #tpu.dot_dimension_numbers<[1], [0], [0], [1], [0, 0, 1, 1], [], []>} : vector<8x512xbf16>, vector<512x384xbf16>, vector<8x384xf32> -> vector<8x384xf32>
    %36 = arith.truncf %18 : vector<8x4xf32> to vector<8x4xbf16>
    %c512 = arith.constant 512 : index
    %c0_18 = arith.constant 0 : index
    %37 = vector.load %arg3[%c512, %c0_18] : memref<520x384xbf16, #tpu.memory_space<vmem>>, vector<4x384xbf16>
    %cst_19 = arith.constant dense<0.000000e+00> : vector<8x384xf32>
    %38 = tpu.matmul %36, %37, %cst_19 {dimension_numbers = #tpu.dot_dimension_numbers<[1], [0], [0], [1], [0, 0, 1, 1], [], []>} : vector<8x4xbf16>, vector<4x384xbf16>, vector<8x384xf32> -> vector<8x384xf32>
    %39 = arith.addf %35, %38 : vector<8x384xf32>
    %40 = vector.extract_strided_slice %20 {offsets = [0, 0], sizes = [1, 384], strides = [1, 1]} : vector<3x384xf32> to vector<1x384xf32>
    %41 = vector.broadcast %40 : vector<1x384xf32> to vector<8x384xf32>
    %42 = arith.addf %39, %41 : vector<8x384xf32>
    %cst_20 = arith.constant 0.000000e+00 : f32
    %43 = vector.broadcast %cst_20 : f32 to vector<8x384xf32>
    %44 = arith.maximumf %42, %43 : vector<8x384xf32>
    %45 = vector.extract_strided_slice %20 {offsets = [1, 0], sizes = [1, 384], strides = [1, 1]} : vector<3x384xf32> to vector<1x384xf32>
    %46 = vector.extract_strided_slice %20 {offsets = [2, 0], sizes = [1, 1], strides = [1, 1]} : vector<3x384xf32> to vector<1x1xf32>
    %47 = vector.broadcast %45 : vector<1x384xf32> to vector<8x384xf32>
    %48 = arith.mulf %44, %47 : vector<8x384xf32>
    %cst_21 = arith.constant dense<0.000000e+00> : vector<8xf32>
    %49 = vector.multi_reduction <add>, %48, %cst_21 [1] : vector<8x384xf32> to vector<8xf32>
    %50 = vector.shape_cast %49 : vector<8xf32> to vector<8x1xf32>
    %51 = vector.broadcast %46 : vector<1x1xf32> to vector<8x1xf32>
    %52 = arith.addf %50, %51 : vector<8x1xf32>
    %c0_22 = arith.constant 0 : index
    %c0_23 = arith.constant 0 : index
    %53 = vector.load %arg6[%c0_22, %c0_23] : memref<8x1xf32, #tpu.memory_space<vmem>>, vector<8x1xf32>
    tpu.vector_store %arg6[%c0_22, %c0_23], %52 {strides = array<i32>} : memref<8x1xf32, #tpu.memory_space<vmem>>, vector<8x1xf32>,
    return
  }
}

</mosaic_0001>

<bundles_post_ra>
// kernel: critic_forward.1
= control target key start
LH: loop header
LB: loop body
LE: loop exit
PB: predicated region body
PF: predicated region fallthrough
CT: control target
= control target key end

     0   :  { %11 = vsyncpa [#allocation3], 0  ;;  %s1933_s0 = inlined_call_operand.hbm [shape: f32[8,32], index: 0, kind: input, shape index: {}]   ;;  %s1934_s1 = inlined_call_operand.vmem [shape: f32[8,4], index: 1, kind: input, shape index: {}]   ;;  %s1935_s2 = inlined_call_operand.hbm [shape: bf16[32,512], index: 2, kind: input, shape index: {}]   ;;  %s1936_s3 = inlined_call_operand.hbm [shape: bf16[520,384], index: 3, kind: input, shape index: {}]   ;;  %s1937_s4 = inlined_call_operand.vmem [shape: f32[2,512], index: 4, kind: input, shape index: {}]   ;;  %s1938_s5 = inlined_call_operand.vmem [shape: f32[3,384], index: 5, kind: input, shape index: {}]   ;;  %s1939_s6 = inlined_call_operand.vmem [shape: f32[8,1], index: 6, kind: output, shape index: {}]  }
   0x1   :  { %12 = vsyncpa [#allocation5], 0  ;;  %s1754_s21 = smov [#allocation4]   ;;  %s1684_s25 = scalar_lea.hbm %s1935_s2, 1024 }
   0x2   :  { %s30_s22 = sshll.u32 %s1754_s21, 4  ;;  %p1685_p0 = scmp.ne.s32.totalorder %s1935_s2, %s1684_s25  ;;  %s31_s22 = int_to_ptr.vmem [resolvable:$true] %s30_s22 }
   0x3   :  { %p1688_p1 = scmp.lt.u32.totalorder %s1684_s25, %s1935_s2 }
   0x5   :  { %p1690_p2 = pnand %p1688_p1, %p1685_p0 }
   0x7   :  { %1693 = shalt.err (!%p1690_p2)
}
   0x8   :  { %s1694_s30 = scalar_lea.vmem %s31_s22, 1024  ;;  %p1699_p4 = scmp.lt.s32.totalorder %s31_s22, %s31_s22 }
   0x9   :  { %p1695_p3 = scmp.ne.s32.totalorder %s31_s22, %s1694_s30  ;;  %p1700_p5 = scmp.lt.s32.totalorder %s1694_s30, %s1694_s30 }
   0xb   :  { %p1701_p6 = por %p1700_p5, %p1699_p4 }
   0xd   :  { %p1702_p7 = pnand %p1701_p6, %p1695_p3 }
   0xf   :  { %1705 = shalt.err (!%p1702_p7)
}
  0x10   :  { %s1755_s7 = smov 256   ;;  %s1756_s8 = smov 16  }
  0x11   :  { %36 = dma.hbm_to_vmem [thread:$0]  %s1935_s2, 1024, %s31_s22, [#allocation5], %s1755_s7, %s1755_s7, %s1756_s8  }
  0x12   :  { %s1757_s11 = smov [#allocation2]   ;;  %s1758_s13 = smov [#allocation6]  }
  0x13   :  { %s19_s12 = sshll.u32 %s1757_s11, 4  ;;  %s42_s14 = sshll.u32 %s1758_s13, 4  ;;  %s20_s12 = int_to_ptr.vmem [resolvable:$true] %s19_s12  ;;  %s43_s14 = int_to_ptr.vmem [resolvable:$true] %s42_s14 }
  0x14   :  { %s1706_s17 = scalar_lea.hbm %s1933_s0, 128 }
  0x15   :  { %p1707_p8 = scmp.ne.s32.totalorder %s1933_s0, %s1706_s17  ;;  %p1710_p9 = scmp.lt.u32.totalorder %s1706_s17, %s1933_s0 }
  0x17   :  { %p1712_p10 = pnand %p1710_p9, %p1707_p8 }
  0x19   :  { %1715 = shalt.err (!%p1712_p10)
}
  0x1a   :  { %s1716_s2 = scalar_lea.vmem %s20_s12, 128  ;;  %p1721_p12 = scmp.lt.s32.totalorder %s20_s12, %s20_s12 }
  0x1b   :  { %p1717_p11 = scmp.ne.s32.totalorder %s20_s12, %s1716_s2  ;;  %p1722_p13 = scmp.lt.s32.totalorder %s1716_s2, %s1716_s2 }
  0x1d   :  { %p1723_p0 = por %p1722_p13, %p1721_p12 }
  0x1f   :  { %p1724_p1 = pnand %p1723_p0, %p1717_p11 }
  0x21   :  { %1727 = shalt.err (!%p1724_p1)
}
  0x22   :  { %22 = dma.hbm_to_vmem [thread:$0]  %s1933_s0, 128, %s20_s12, [#allocation3]  }
  0x23   :  { %s1728_s26 = scalar_lea.hbm %s1936_s3, 12480 }
  0x24   :  { %p1729_p2 = scmp.ne.s32.totalorder %s1936_s3, %s1728_s26  ;;  %p1732_p3 = scmp.lt.u32.totalorder %s1728_s26, %s1936_s3 }
  0x26   :  { %p1734_p4 = pnand %p1732_p3, %p1729_p2 }
  0x28   :  { %1737 = shalt.err (!%p1734_p4)
}
  0x29   :  { %s1738_s7 = scalar_lea.vmem %s43_s14, 12480  ;;  %p1743_p6 = scmp.lt.s32.totalorder %s43_s14, %s43_s14 }
  0x2a   :  { %p1739_p5 = scmp.ne.s32.totalorder %s43_s14, %s1738_s7  ;;  %p1744_p7 = scmp.lt.s32.totalorder %s1738_s7, %s1738_s7 }
  0x2c   :  { %p1745_p8 = por %p1744_p7, %p1743_p6 }
  0x2e   :  { %p1746_p9 = pnand %p1745_p8, %p1739_p5 }
  0x30   :  { %1749 = shalt.err (!%p1746_p9)
}
  0x31   :  { %s1759_s0 = smov 192   ;;  %s1760_s8 = smov 12  }
  0x32   :  { %48 = dma.hbm_to_vmem [thread:$0]  %s1936_s3, 12480, %s43_s14, [#allocation5], %s1759_s0, %s1759_s0, %s1760_s8  }
  0x33   :  { %1750 = dma.done.wait [#allocation3], 128  }
  0x34   :  { %1751 = vsyncadd [#allocation3], 4294967168 }
  0x35   :  { %1752 = dma.done.wait [#allocation5], 13504  }
  0x36   :  { %1753 = vsyncadd [#allocation5], 4294953792  ;;  %v1761_v0 = vmov 0   ;;  %v1533_v1 = vld [vmem:[#allocation4 + $0x4] ss:$16 sps:$4 sm:$0xff]   ;;  %v63_v9 = vld [vmem:[#allocation2] sm:$0xff] }
  0x37   :  { %149 = vmatprep.mubr.bf16.mxu0 %v1761_v0  ;;  %190 = vmatprep.mubr.bf16.mxu1 %v1761_v0  ;;  %v1535_v2 = vld [vmem:[#allocation4 + $0xc] ss:$16 sps:$4 sm:$0xff]   ;;  %v1537_v3 = vld [vmem:[#allocation4] ss:$16 sps:$4 sm:$0xff]   ;;  %v1538_v4 = vld [vmem:[#allocation4 + $0x8] ss:$16 sps:$4 sm:$0xff]   ;;  %v64_v14 = vpack.c.bf16 %v63_v9, %v63_v9 }
  0x38   :  { %117 = vmatprep.subr.bf16.mxu0 %v1533_v1  ;;  %158 = vmatprep.subr.bf16.mxu1 %v1535_v2  ;;  %v1539_v5 = vld [vmem:[#allocation4 + $0x24] ss:$16 sps:$4 sm:$0xff]   ;;  %v1541_v6 = vld [vmem:[#allocation4 + $0x2c] ss:$16 sps:$4 sm:$0xff]   ;;  %v1543_v7 = vld [vmem:[#allocation4 + $0x20] ss:$16 sps:$4 sm:$0xff]  }
  0x39   :  { %118 = vmatpush1.bf16.msra.mxu0 %v1537_v3  ;;  %159 = vmatpush1.bf16.msra.mxu1 %v1538_v4  ;;  %v1544_v8 = vld [vmem:[#allocation4 + $0x28] ss:$16 sps:$4 sm:$0xff]   ;;  %v498_v10 = vld [vmem:[#allocation6 + $0x300] sm:$0x33]  ;;  %vm512_vm0 = vcmask 1041408   ;;  %vm113_vm1 = vcmask 261120  }
  0x3a   :  { %119 = vmatprep.subr.bf16.mxu0 %v1539_v5  ;;  %160 = vmatprep.subr.bf16.mxu1 %v1541_v6  ;;  %v1370_v11 = vcombine.high %v498_v10, %v498_v10  ;;  %v1369_v12 = vcombine.low %v498_v10, %v498_v10  ;;  %v1547_v13 = vld [vmem:[#allocation6 + $0x308] ss:$0 sps:$4 sm:$0x33]   ;;  %v1762_v16 = vmov 0.0   ;;  %v1550_v18 = vld [vmem:[#allocation6 + $0x4] ss:$12 sps:$4 sm:$0xff]  }
  0x3b   :  { %v520_v17 = vsel %vm512_vm0, %v1547_v13, 0  ;;  %v1553_v19 = vld [vmem:[#allocation6 + $0x184] ss:$12 sps:$4 sm:$0xff]   ;;  %v272_v20 = vld [vmem:[%s1934_s1] sm:$0xff]  ;;  %vm1763_vm2 = vmmov 0   ;;  %vm508_vm3 = vcmask 31744  }
  0x3c   :  { %v514_v15 = vsel %vm512_vm0, %v1369_v12, 0  ;;  %v1548_v21 = vld [vmem:[#allocation6] ss:$12 sps:$4 sm:$0xff]   ;;  %v497_v23 = vpack.c.bf16 %v272_v20, %v272_v20  ;;  %v1556_v24 = vld [vmem:[#allocation6 + $0x1c] ss:$12 sps:$4 sm:$0xff]   ;;  %vm1351_vm4 = vcmask 7168  }
  0x3d   :  { %120 = vmatpush1.bf16.msra.mxu0 %v1543_v7  ;;  %161 = vmatpush1.bf16.msra.mxu1 %v1544_v8  ;;  %v1551_v22 = vld [vmem:[#allocation6 + $0x180] ss:$12 sps:$4 sm:$0xff]   ;;  %v1559_v25 = vld [vmem:[#allocation6 + $0x19c] ss:$12 sps:$4 sm:$0xff]   ;;  %v1554_v26 = vld [vmem:[#allocation6 + $0x18] ss:$12 sps:$4 sm:$0xff]  }
  0x3e   :  { %1372 = vmatprep.subr.msk.bf16.mxu0 %vm512_vm0, %v1370_v11  ;;  %1517 = vmatprep.subr.bf16.mxu1 %v1762_v16  ;;  %v1557_v27 = vld [vmem:[#allocation6 + $0x198] ss:$12 sps:$4 sm:$0xff]   ;;  %v1562_v28 = vld [vmem:[#allocation6 + $0x34] ss:$12 sps:$4 sm:$0xff]   ;;  %v1560_v30 = vld [vmem:[#allocation6 + $0x30] ss:$12 sps:$4 sm:$0xff]  }
  0x3f   :  { %v1565_v29 = vld [vmem:[#allocation6 + $0x1b4] ss:$12 sps:$4 sm:$0xff]   ;;  %v1563_v31 = vld [vmem:[#allocation6 + $0x1b0] ss:$12 sps:$4 sm:$0xff]   ;;  %v1568_v32 = vld [vmem:[#allocation6 + $0x4c] ss:$12 sps:$4 sm:$0xff]  }
  0x40   :  { %1367 = vmatmul.mubr.msk.bf16.vlgmr.msra.gmra.mrb[0].mxu0 %vm113_vm1, %v64_v14  ;;  %1368 = vmatmul.mubr.msk.bf16.vlgmr.msra.gmra.mrb[0].mxu1 %vm113_vm1, %v64_v14  ;;  %v1571_v33 = vld [vmem:[#allocation6 + $0x1cc] ss:$12 sps:$4 sm:$0xff]   ;;  %v1566_v34 = vld [vmem:[#allocation6 + $0x48] ss:$12 sps:$4 sm:$0xff]   ;;  %v1574_v36 = vld [vmem:[#allocation6 + $0x64] ss:$12 sps:$4 sm:$0xff]  }
  0x41   :  { %523 = vmatpush1.bf16.msra.mxu0 %v514_v15  ;;  %1518 = vmatpush3.bf16.msra.mxu1 %v520_v17  ;;  %v1569_v35 = vld [vmem:[#allocation6 + $0x1c8] ss:$12 sps:$4 sm:$0xff]   ;;  %v1577_v37 = vld [vmem:[#allocation6 + $0x1e4] ss:$12 sps:$4 sm:$0xff]   ;;  %v1572_v38 = vld [vmem:[#allocation6 + $0x60] ss:$12 sps:$4 sm:$0xff]  }
  0x42   :  { %554 = vmatprep.mubr.bf16.mxu0 %v1761_v0  ;;  %1519 = vmatprep.mubr.msk.bf16.mxu1 %vm1763_vm2, %v1762_v16  ;;  %v1575_v39 = vld [vmem:[#allocation6 + $0x1e0] ss:$12 sps:$4 sm:$0xff]   ;;  %v1580_v40 = vld [vmem:[#allocation6 + $0x7c] ss:$12 sps:$4 sm:$0xff]   ;;  %v1578_v42 = vld [vmem:[#allocation6 + $0x78] ss:$12 sps:$4 sm:$0xff]  }
  0x43   :  { %1115 = vmatprep.subr.bf16.mxu0 %v1550_v18  ;;  %1156 = vmatprep.subr.bf16.mxu1 %v1553_v19  ;;  %v1583_v41 = vld [vmem:[#allocation6 + $0x1fc] ss:$12 sps:$4 sm:$0xff]   ;;  %v1581_v43 = vld [vmem:[#allocation6 + $0x1f8] ss:$12 sps:$4 sm:$0xff]   ;;  %v1586_v44 = vld [vmem:[#allocation6 + $0x94] ss:$12 sps:$4 sm:$0xff]  }
  0x44   :  { %v1589_v45 = vld [vmem:[#allocation6 + $0x214] ss:$12 sps:$4 sm:$0xff]   ;;  %v1584_v46 = vld [vmem:[#allocation6 + $0x90] ss:$12 sps:$4 sm:$0xff]   ;;  %v1592_v48 = vld [vmem:[#allocation6 + $0xac] ss:$12 sps:$4 sm:$0xff]  }
  0x45   :  { %v1587_v47 = vld [vmem:[#allocation6 + $0x210] ss:$12 sps:$4 sm:$0xff]   ;;  %v1595_v49 = vld [vmem:[#allocation6 + $0x22c] ss:$12 sps:$4 sm:$0xff]   ;;  %v1590_v50 = vld [vmem:[#allocation6 + $0xa8] ss:$12 sps:$4 sm:$0xff]  }
  0x46   :  { %v1593_v51 = vld [vmem:[#allocation6 + $0x228] ss:$12 sps:$4 sm:$0xff]   ;;  %v1598_v52 = vld [vmem:[#allocation6 + $0xc4] ss:$12 sps:$4 sm:$0xff]   ;;  %v1596_v54 = vld [vmem:[#allocation6 + $0xc0] ss:$12 sps:$4 sm:$0xff]  }
  0x47   :  { %v1601_v53 = vld [vmem:[#allocation6 + $0x244] ss:$12 sps:$4 sm:$0xff]   ;;  %v1599_v55 = vld [vmem:[#allocation6 + $0x240] ss:$12 sps:$4 sm:$0xff]   ;;  %v1604_v56 = vld [vmem:[#allocation6 + $0xdc] ss:$12 sps:$4 sm:$0xff]  }
  0x48   :  { %1373 = vmatmul.mubr.msk.bf16.vlgmr.msra.gmra.mrb[4].mxu0 %vm508_vm3, %v497_v23  ;;  %1520 = vmatmul.mubr.msk.bf16.vlgmr.msra.gmra.mrb[4].mxu1 %vm508_vm3, %v497_v23  ;;  %v1607_v57 = vld [vmem:[#allocation6 + $0x25c] ss:$12 sps:$4 sm:$0xff]   ;;  %v1602_v58 = vld [vmem:[#allocation6 + $0xd8] ss:$12 sps:$4 sm:$0xff]   ;;  %v1610_v60 = vld [vmem:[#allocation6 + $0xf4] ss:$12 sps:$4 sm:$0xff]  }
  0x49   :  { %1116 = vmatpush1.bf16.msra.mxu0 %v1548_v21  ;;  %1157 = vmatpush1.bf16.msra.mxu1 %v1551_v22  ;;  %v1605_v59 = vld [vmem:[#allocation6 + $0x258] ss:$12 sps:$4 sm:$0xff]   ;;  %v1613_v61 = vld [vmem:[#allocation6 + $0x274] ss:$12 sps:$4 sm:$0xff]   ;;  %v1608_v62 = vld [vmem:[#allocation6 + $0xf0] ss:$12 sps:$4 sm:$0xff]  }
  0x4a   :  { %1117 = vmatprep.subr.bf16.mxu0 %v1556_v24  ;;  %1158 = vmatprep.subr.bf16.mxu1 %v1559_v25  ;;  %v1611_v63 = vld [vmem:[#allocation6 + $0x270] ss:$12 sps:$4 sm:$0xff]   ;;  %v1616_v0 = vld [vmem:[#allocation6 + $0x10c] ss:$12 sps:$4 sm:$0xff]   ;;  %v1614_v2 = vld [vmem:[#allocation6 + $0x108] ss:$12 sps:$4 sm:$0xff]  }
  0x4b   :  { %v1619_v1 = vld [vmem:[#allocation6 + $0x28c] ss:$12 sps:$4 sm:$0xff]   ;;  %v1617_v3 = vld [vmem:[#allocation6 + $0x288] ss:$12 sps:$4 sm:$0xff]   ;;  %v1622_v4 = vld [vmem:[#allocation6 + $0x124] ss:$12 sps:$4 sm:$0xff]  }
  0x4c   :  { %v1625_v5 = vld [vmem:[#allocation6 + $0x2a4] ss:$12 sps:$4 sm:$0xff]   ;;  %v1620_v6 = vld [vmem:[#allocation6 + $0x120] ss:$12 sps:$4 sm:$0xff]   ;;  %v1628_v8 = vld [vmem:[#allocation6 + $0x13c] ss:$12 sps:$4 sm:$0xff]  }
  0x4d   :  { %1118 = vmatpush1.bf16.msra.mxu0 %v1554_v26  ;;  %1159 = vmatpush1.bf16.msra.mxu1 %v1557_v27  ;;  %v1623_v7 = vld [vmem:[#allocation6 + $0x2a0] ss:$12 sps:$4 sm:$0xff]   ;;  %v1631_v9 = vld [vmem:[#allocation6 + $0x2bc] ss:$12 sps:$4 sm:$0xff]   ;;  %v1626_v10 = vld [vmem:[#allocation6 + $0x138] ss:$12 sps:$4 sm:$0xff]  }
  0x4e   :  { %1119 = vmatprep.subr.bf16.mxu0 %v1562_v28  ;;  %1160 = vmatprep.subr.bf16.mxu1 %v1565_v29  ;;  %v1629_v11 = vld [vmem:[#allocation6 + $0x2b8] ss:$12 sps:$4 sm:$0xff]   ;;  %v1632_v12 = vld [vmem:[#allocation6 + $0x150] ss:$12 sps:$4 sm:$0xff]   ;;  %v1634_v13 = vld [vmem:[#allocation6 + $0x154] ss:$12 sps:$4 sm:$0xff]  }
  0x4f   :  { %v1635_v14 = vld [vmem:[#allocation6 + $0x2d0] ss:$12 sps:$4 sm:$0xff]   ;;  %v1637_v15 = vld [vmem:[#allocation6 + $0x2d4] ss:$12 sps:$4 sm:$0xff]   ;;  %v1640_v16 = vld [vmem:[#allocation6 + $0x16c] ss:$12 sps:$4 sm:$0xff]  }
  0x50   :  { %v1643_v17 = vld [vmem:[#allocation6 + $0x2ec] ss:$12 sps:$4 sm:$0xff]   ;;  %v1638_v18 = vld [vmem:[#allocation6 + $0x168] ss:$12 sps:$4 sm:$0xff]  }
  0x51   :  { %1120 = vmatpush1.bf16.msra.mxu0 %v1560_v30  ;;  %1161 = vmatpush1.bf16.msra.mxu1 %v1563_v31  ;;  %v1641_v19 = vld [vmem:[#allocation6 + $0x2e8] ss:$12 sps:$4 sm:$0xff]  }
  0x52   :  { %1121 = vmatprep.subr.bf16.mxu0 %v1568_v32  ;;  %1162 = vmatprep.subr.bf16.mxu1 %v1571_v33  ;;  %v1644_v20 = vld [vmem:[#allocation6 + $0xc8] ss:$12 sps:$4 sm:$0xff]  }
  0x53   :  { %v1645_v21 = vld [vmem:[#allocation6 + $0x248] ss:$12 sps:$4 sm:$0xff]  }
  0x55   :  { %1122 = vmatpush1.bf16.msra.mxu0 %v1566_v34  ;;  %1163 = vmatpush1.bf16.msra.mxu1 %v1569_v35 }
  0x56   :  { %1123 = vmatprep.subr.bf16.mxu0 %v1574_v36  ;;  %1164 = vmatprep.subr.bf16.mxu1 %v1577_v37 }
  0x59   :  { %1124 = vmatpush1.bf16.msra.mxu0 %v1572_v38  ;;  %1165 = vmatpush1.bf16.msra.mxu1 %v1575_v39 }
  0x5a   :  { %1125 = vmatprep.subr.bf16.mxu0 %v1580_v40  ;;  %1166 = vmatprep.subr.bf16.mxu1 %v1583_v41 }
  0x5d   :  { %1126 = vmatpush1.bf16.msra.mxu0 %v1578_v42  ;;  %1167 = vmatpush1.bf16.msra.mxu1 %v1581_v43 }
  0x5e   :  { %1127 = vmatprep.subr.bf16.mxu0 %v1586_v44  ;;  %1168 = vmatprep.subr.bf16.mxu1 %v1589_v45 }
  0x61   :  { %1128 = vmatpush1.bf16.msra.mxu0 %v1584_v46  ;;  %1169 = vmatpush1.bf16.msra.mxu1 %v1587_v47 }
  0x62   :  { %1129 = vmatprep.subr.bf16.mxu0 %v1592_v48  ;;  %1170 = vmatprep.subr.bf16.mxu1 %v1595_v49 }
  0x65   :  { %1130 = vmatpush1.bf16.msra.mxu0 %v1590_v50  ;;  %1171 = vmatpush1.bf16.msra.mxu1 %v1593_v51 }
  0x66   :  { %1131 = vmatprep.subr.bf16.mxu0 %v1598_v52  ;;  %1172 = vmatprep.subr.bf16.mxu1 %v1601_v53 }
  0x69   :  { %1132 = vmatpush1.bf16.msra.mxu0 %v1596_v54  ;;  %1173 = vmatpush1.bf16.msra.mxu1 %v1599_v55 }
  0x6a   :  { %1133 = vmatprep.subr.bf16.mxu0 %v1604_v56  ;;  %1174 = vmatprep.subr.bf16.mxu1 %v1607_v57 }
  0x6d   :  { %1134 = vmatpush1.bf16.msra.mxu0 %v1602_v58  ;;  %1175 = vmatpush1.bf16.msra.mxu1 %v1605_v59 }
  0x6e   :  { %1135 = vmatprep.subr.bf16.mxu0 %v1610_v60  ;;  %1176 = vmatprep.subr.bf16.mxu1 %v1613_v61 }
  0x71   :  { %1136 = vmatpush1.bf16.msra.mxu0 %v1608_v62  ;;  %1177 = vmatpush1.bf16.msra.mxu1 %v1611_v63 }
  0x72   :  { %1137 = vmatprep.subr.bf16.mxu0 %v1616_v0  ;;  %1178 = vmatprep.subr.bf16.mxu1 %v1619_v1 }
  0x75   :  { %1138 = vmatpush1.bf16.msra.mxu0 %v1614_v2  ;;  %1179 = vmatpush1.bf16.msra.mxu1 %v1617_v3 }
  0x76   :  { %1139 = vmatprep.subr.bf16.mxu0 %v1622_v4  ;;  %1180 = vmatprep.subr.bf16.mxu1 %v1625_v5 }
  0x79   :  { %1140 = vmatpush1.bf16.msra.mxu0 %v1620_v6  ;;  %1181 = vmatpush1.bf16.msra.mxu1 %v1623_v7 }
  0x7a   :  { %1141 = vmatprep.subr.bf16.mxu0 %v1628_v8  ;;  %1182 = vmatprep.subr.bf16.mxu1 %v1631_v9 }
  0x7d   :  { %1142 = vmatpush1.bf16.msra.mxu0 %v1626_v10  ;;  %1183 = vmatpush1.bf16.msra.mxu1 %v1629_v11 }
  0x7e   :  { %1143 = vmatprep.subr.bf16.mxu0 %v1634_v13  ;;  %1184 = vmatprep.subr.bf16.mxu1 %v1637_v15 }
  0x81   :  { %1144 = vmatpush1.bf16.msra.mxu0 %v1632_v12  ;;  %1185 = vmatpush1.bf16.msra.mxu1 %v1635_v14 }
  0x82   :  { %1145 = vmatprep.subr.bf16.mxu0 %v1640_v16  ;;  %1186 = vmatprep.subr.bf16.mxu1 %v1643_v17 }
  0x85   :  { %1146 = vmatpush1.bf16.msra.mxu0 %v1638_v18  ;;  %1187 = vmatpush1.bf16.msra.mxu1 %v1641_v19 }
  0x86   :  { %1473 = vmatprep.subr.bf16.mxu0 %v1644_v20  ;;  %1495 = vmatprep.subr.bf16.mxu1 %v1645_v21 }
 0x113   :  { %v151_v22 = vpop.f32.mrb[0].mxu0  ;;  %v192_v23 = vpop.f32.mrb[0].mxu1 }
 0x114   :  { %v199_v24 = vrot.slane %v151_v22, 4  ;;  %v211_v25 = vrot.slane %v192_v23, 4  ;;  %v153_v26 = vpop.f32.mrb[1].mxu0  ;;  %v194_v27 = vpop.f32.mrb[1].mxu1 }
 0x115   :  { %v205_v28 = vrot.slane %v153_v26, 4  ;;  %v217_v29 = vrot.slane %v194_v27, 4  ;;  %v155_v30 = vpop.f32.mrb[2].mxu0  ;;  %v196_v31 = vpop.f32.mrb[2].mxu1 }
 0x116   :  { %v200_v32 = vadd.f32 %v199_v24, %v151_v22  ;;  %v212_v33 = vadd.f32 %v211_v25, %v192_v23  ;;  %v156_v34 = vpop.f32.mrb[3].mxu0  ;;  %v197_v35 = vpop.f32.mrb[3].mxu1 }
 0x117   :  { %v206_v36 = vadd.f32 %v205_v28, %v153_v26  ;;  %v218_v37 = vadd.f32 %v217_v29, %v194_v27  ;;  %v281_v28 = vlaneseq }
 0x118   :  { %v201_v38 = vrot.slane %v200_v32, 2  ;;  %v213_v39 = vrot.slane %v212_v33, 2 }
 0x119   :  { %v207_v40 = vrot.slane %v206_v36, 2  ;;  %v219_v41 = vrot.slane %v218_v37, 2 }
 0x11a   :  { %v202_v42 = vadd.f32 %v201_v38, %v200_v32  ;;  %v214_v43 = vadd.f32 %v213_v39, %v212_v33 }
 0x11b   :  { %v208_v44 = vadd.f32 %v207_v40, %v206_v36  ;;  %v220_v45 = vadd.f32 %v219_v41, %v218_v37  ;;  %v1838_v46 = vpop.f32.mrb[4].mxu0  ;;  %v1840_v47 = vpop.f32.mrb[4].mxu1  ;;  %v1860_v37 = vshrl.u32 %v281_v28, 7 }
 0x11c   :  { %v203_v48 = vrot.slane %v202_v42, 1  ;;  %v215_v49 = vrot.slane %v214_v43, 1  ;;  %v1842_v50 = vpop.f32.mrb[5].mxu0  ;;  %v1521_v51 = vpop.f32.mrb[5].mxu1 }
 0x11d   :  { %v209_v52 = vrot.slane %v208_v44, 1  ;;  %v221_v53 = vrot.slane %v220_v45, 1  ;;  %v560_v54 = vpop.f32.mrb[6].mxu0  ;;  %v600_v55 = vpop.f32.mrb[6].mxu1  ;;  %v1871_v51 = vsub.s32 1, %v1860_v37 }
 0x11e   :  { %v204_v56 = vadd.f32 %v203_v48, %v202_v42  ;;  %v216_v57 = vadd.f32 %v215_v49, %v214_v43  ;;  %v561_v58 = vpop.f32.mrb[7].mxu0  ;;  %v1522_v59 = vpop.f32.mrb[7].mxu1  ;;  %v291_v48 = vsub.s32 4, %v1860_v37  ;;  %v287_v49 = vsub.s32 2, %v1860_v37 }
 0x11f   :  { %v210_v60 = vadd.f32 %v209_v52, %v208_v44  ;;  %v222_v61 = vadd.f32 %v221_v53, %v220_v45  ;;  %v1863_v44 = vsub.s32 0, %v1860_v37  ;;  %v273_v45 = vld [vmem:[%s1937_s4] sm:$0xff]  ;;  %v295_v52 = vsub.s32 6, %v1860_v37 }
 0x120   :  { %v224_v62 = vmul.f32 0.125, %v204_v56  ;;  %v226_v63 = vmul.f32 0.125, %v216_v57  ;;  %v331_v53 = vsub.s32 5, %v1860_v37  ;;  %v327_v55 = vsub.s32 3, %v1860_v37 }
 0x121   :  { %v225_v0 = vmul.f32 0.125, %v210_v60  ;;  %v227_v1 = vmul.f32 0.125, %v222_v61  ;;  %v284_v54 = vrot.slane %v273_v45, %v1863_v44  ;;  %v292_v56 = vrot.slane %v273_v45, %v291_v48 }
 0x122   :  { %v1844_v2 = vsub.f32 %v151_v22, %v224_v62  ;;  %v1846_v3 = vsub.f32 %v192_v23, %v226_v63  ;;  %v335_v57 = vsub.s32 7, %v1860_v37  ;;  %v288_v58 = vrot.slane %v273_v45, %v287_v49 }
 0x123   :  { %v1848_v4 = vsub.f32 %v153_v26, %v225_v0  ;;  %v1850_v5 = vsub.f32 %v194_v27, %v227_v1  ;;  %v324_v59 = vrot.slane %v273_v45, %v1871_v51  ;;  %v296_v60 = vrot.slane %v273_v45, %v295_v52  ;;  %v1658_v52 = vld [vmem:[#allocation6 + $0x50] ss:$12 sps:$4 sm:$0xff]  }
 0x124   :  { %v232_v6 = vmul.f32 %v1844_v2, %v1844_v2  ;;  %v234_v7 = vmul.f32 %v1846_v3, %v1846_v3  ;;  %v332_v61 = vrot.slane %v273_v45, %v331_v53  ;;  %v304_v62 = vrot.slane %v284_v54, %v1863_v44  ;;  %v1659_v54 = vld [vmem:[#allocation6 + $0x1d0] ss:$12 sps:$4 sm:$0xff]  }
 0x125   :  { %v233_v8 = vmul.f32 %v1848_v4, %v1848_v4  ;;  %v235_v9 = vmul.f32 %v1850_v5, %v1850_v5  ;;  %v328_v63 = vrot.slane %v273_v45, %v327_v55  ;;  %v312_v1 = vrot.slane %v292_v56, %v1863_v44  ;;  %v1660_v55 = vld [vmem:[#allocation6 + $0x128] ss:$12 sps:$4 sm:$0xff]  }
 0x126   :  { %v236_v10 = vrot.slane %v232_v6, 4  ;;  %v248_v11 = vrot.slane %v234_v7, 4  ;;  %v1661_v56 = vld [vmem:[#allocation6 + $0x2a8] ss:$12 sps:$4 sm:$0xff]  }
 0x127   :  { %v242_v12 = vrot.slane %v233_v8, 4  ;;  %v254_v13 = vrot.slane %v235_v9, 4 }
 0x128   :  { %v237_v14 = vadd.f32 %v236_v10, %v232_v6  ;;  %v249_v15 = vadd.f32 %v248_v11, %v234_v7  ;;  %v336_v6 = vrot.slane %v273_v45, %v335_v57  ;;  %v344_v10 = vrot.slane %v324_v59, %v1871_v51  ;;  %v1657_v45 = vld [vmem:[#allocation6 + $0x290] ss:$12 sps:$4 sm:$0xff]   ;;  %v1662_v57 = vld [vmem:[#allocation6 + $0x68] ss:$12 sps:$4 sm:$0xff]   ;;  %v1664_v59 = vld [vmem:[#allocation6 + $0x140] ss:$12 sps:$4 sm:$0xff]  }
 0x129   :  { %v243_v16 = vadd.f32 %v242_v12, %v233_v8  ;;  %v255_v17 = vadd.f32 %v254_v13, %v235_v9  ;;  %v308_v9 = vrot.slane %v288_v58, %v1863_v44  ;;  %v316_v13 = vrot.slane %v296_v60, %v1863_v44  ;;  %v1663_v58 = vld [vmem:[#allocation6 + $0x1e8] ss:$12 sps:$4 sm:$0xff]   ;;  %v1665_v60 = vld [vmem:[#allocation6 + $0x2c0] ss:$12 sps:$4 sm:$0xff]  }
 0x12a   :  { %v238_v18 = vrot.slane %v237_v14, 2  ;;  %v250_v19 = vrot.slane %v249_v15, 2 }
 0x12b   :  { %v244_v20 = vrot.slane %v243_v16, 2  ;;  %v256_v21 = vrot.slane %v255_v17, 2 }
 0x12c   :  { %v239_v22 = vadd.f32 %v238_v18, %v237_v14  ;;  %v251_v23 = vadd.f32 %v250_v19, %v249_v15  ;;  %v352_v14 = vrot.slane %v332_v61, %v1871_v51  ;;  %v348_v18 = vrot.slane %v328_v63, %v1871_v51  ;;  %v1666_v61 = vld [vmem:[#allocation6 + $0x80] ss:$12 sps:$4 sm:$0xff]   ;;  %v1668_v63 = vld [vmem:[#allocation6 + $0x158] ss:$12 sps:$4 sm:$0xff]  }
 0x12d   :  { %v245_v24 = vadd.f32 %v244_v20, %v243_v16  ;;  %v257_v25 = vadd.f32 %v256_v21, %v255_v17  ;;  %v356_v20 = vrot.slane %v336_v6, %v1871_v51  ;;  %v1671_v6 = vld [vmem:[#allocation6 + $0x218] ss:$12 sps:$4 sm:$0xff]  }
 0x12e   :  { %v240_v26 = vrot.slane %v239_v22, 1  ;;  %v252_v27 = vrot.slane %v251_v23, 1 }
 0x12f   :  { %v246_v29 = vrot.slane %v245_v24, 1  ;;  %v258_v30 = vrot.slane %v257_v25, 1 }
 0x130   :  { %v241_v31 = vadd.f32 %v240_v26, %v239_v22  ;;  %v253_v32 = vadd.f32 %v252_v27, %v251_v23 }
 0x131   :  { %v247_v33 = vadd.f32 %v246_v29, %v245_v24  ;;  %v259_v34 = vadd.f32 %v258_v30, %v257_v25 }
 0x132   :  { %v260_v35 = vmul.f32 0.125, %v241_v31  ;;  %v262_v36 = vmul.f32 0.125, %v253_v32  ;;  %v1646_v31 = vld [vmem:[#allocation6 + $0x8] ss:$12 sps:$4 sm:$0xff]  }
 0x133   :  { %v261_v38 = vmul.f32 0.125, %v247_v33  ;;  %v263_v39 = vmul.f32 0.125, %v259_v34  ;;  %v1647_v33 = vld [vmem:[#allocation6 + $0x188] ss:$12 sps:$4 sm:$0xff]   ;;  %v1648_v34 = vld [vmem:[#allocation6 + $0xe0] ss:$12 sps:$4 sm:$0xff]  }
 0x134   :  { %v264_v40 = vadd.f32 1e-05, %v260_v35  ;;  %v266_v41 = vadd.f32 1e-05, %v262_v36  ;;  %v1649_v35 = vld [vmem:[#allocation6 + $0x260] ss:$12 sps:$4 sm:$0xff]  }
 0x135   :  { %v265_v42 = vadd.f32 1e-05, %v261_v38  ;;  %v267_v43 = vadd.f32 1e-05, %v263_v39  ;;  %v1650_v36 = vld [vmem:[#allocation6 + $0x20] ss:$12 sps:$4 sm:$0xff]  }
 0x136   :  { %1676 = vrsqrt.f32 %v264_v40  ;;  %v1651_v38 = vld [vmem:[#allocation6 + $0x1a0] ss:$12 sps:$4 sm:$0xff]   ;;  %v1652_v39 = vld [vmem:[#allocation6 + $0xf8] ss:$12 sps:$4 sm:$0xff]  }
 0x137   :  { %1678 = vrsqrt.f32 %v266_v41  ;;  %v1653_v40 = vld [vmem:[#allocation6 + $0x278] ss:$12 sps:$4 sm:$0xff]  }
 0x138   :  { %1680 = vrsqrt.f32 %v265_v42  ;;  %v1654_v41 = vld [vmem:[#allocation6 + $0x38] ss:$12 sps:$4 sm:$0xff]  }
 0x139   :  { %1682 = vrsqrt.f32 %v267_v43  ;;  %v1655_v42 = vld [vmem:[#allocation6 + $0x1b8] ss:$12 sps:$4 sm:$0xff]   ;;  %v1656_v43 = vld [vmem:[#allocation6 + $0x110] ss:$12 sps:$4 sm:$0xff]  }
 0x140   :  { %v1677_v0 = vpop.eup %1676 }
 0x141   :  { %v1679_v7 = vpop.eup %1678  ;;  %v276_v8 = vmul.f32 %v1677_v0, %v1844_v2  ;;  %v1669_v0 = vld [vmem:[#allocation6 + $0x2d8] ss:$12 sps:$4 sm:$0xff]  }
 0x142   :  { %v1681_v11 = vpop.eup %1680  ;;  %v278_v12 = vmul.f32 %v1679_v7, %v1846_v3  ;;  %v1672_v7 = vld [vmem:[#allocation6 + $0x170] ss:$12 sps:$4 sm:$0xff]  }
 0x143   :  { %v1683_v15 = vpop.eup %1682  ;;  %v317_v16 = vmul.f32 %v304_v62, %v276_v8  ;;  %v277_v17 = vmul.f32 %v1681_v11, %v1848_v4  ;;  %v1667_v62 = vld [vmem:[#allocation6 + $0x200] ss:$12 sps:$4 sm:$0xff]   ;;  %v1673_v8 = vld [vmem:[#allocation6 + $0x2f0] ss:$12 sps:$4 sm:$0xff]  }
 0x144   :  { %v319_v19 = vmul.f32 %v312_v1, %v278_v12  ;;  %v279_v2 = vmul.f32 %v1683_v15, %v1850_v5  ;;  %v1670_v1 = vld [vmem:[#allocation6 + $0x98] ss:$12 sps:$4 sm:$0xff]  }
 0x145   :  { %v318_v21 = vmul.f32 %v308_v9, %v277_v17  ;;  %v357_v22 = vadd.f32 %v344_v10, %v317_v16  ;;  %v1674_v9 = vld [vmem:[#allocation6 + $0xb0] ss:$12 sps:$4 sm:$0xff]  }
 0x146   :  { %v320_v23 = vmul.f32 %v316_v13, %v279_v2  ;;  %v359_v24 = vadd.f32 %v352_v14, %v319_v19  ;;  %v1675_v10 = vld [vmem:[#allocation6 + $0x230] ss:$12 sps:$4 sm:$0xff]  }
 0x147   :  { %v358_v3 = vadd.f32 %v348_v18, %v318_v21  ;;  %v361_v26 = vmax.f32 %v357_v22, 0.0  ;;  %v274_v11 = vld [vmem:[%s1938_s5] sm:$0x77] }
 0x148   :  { %v360_v25 = vadd.f32 %v356_v20, %v320_v23  ;;  %v363_v28 = vmax.f32 %v359_v24, 0.0  ;;  %v1282_v12 = vrot.slane %v274_v11, %v1863_v44  ;;  %v1286_v13 = vrot.slane %v274_v11, %v291_v48 }
 0x149   :  { %v362_v27 = vmax.f32 %v358_v3, 0.0  ;;  %v1897_v32 = vpack.c.bf16 %v361_v26, %v361_v26  ;;  %v1315_v19 = vrot.slane %v274_v11, %v1871_v51  ;;  %v1319_v23 = vrot.slane %v274_v11, %v331_v53  ;;  %v275_v53 = vld [vmem:[%s1938_s5 + $0x8] sm:$0x7] }
 0x14a   :  { %v364_v29 = vmax.f32 %v360_v25, 0.0  ;;  %v1899_v5 = vpack.c.bf16 %v363_v28, %v363_v28  ;;  %v1297_v17 = vrot.slane %v1282_v12, %v1863_v44  ;;  %v1301_v21 = vrot.slane %v1286_v13, %v1863_v44 }
 0x14b   :  { %v366_v30 = vpack.c.bf16 %v362_v27, %v362_v27  ;;  %v1330_v27 = vrot.slane %v1315_v19, %v1871_v51 }
 0x14c   :  { %v368_v4 = vpack.c.bf16 %v364_v29, %v364_v29  ;;  %v1334_v29 = vrot.slane %v1319_v23, %v1871_v51 }
 0x14d   :  { %1147 = vmatprep.mubr.bf16.mxu0 %v366_v30 }
 0x14e   :  { %1188 = vmatprep.mubr.bf16.mxu1 %v368_v4  ;;  %1148 = vmatmul.mubr.bf16.vlgmr.msra.gmra.mrb[8].mxu0 %v1897_v32 }
 0x14f   :  { %1189 = vmatmul.mubr.bf16.vlgmr.msra.gmra.mrb[8].mxu1 %v1899_v5  ;;  %1474 = vmatpush3.bf16.msra.mxu0 %v1646_v31 }
 0x150   :  { %1496 = vmatpush3.bf16.msra.mxu1 %v1647_v33  ;;  %1229 = vmatprep.mubr.bf16.mxu0 %v366_v30 }
 0x151   :  { %1269 = vmatprep.mubr.bf16.mxu1 %v368_v4  ;;  %1475 = vmatprep.subr.bf16.mxu0 %v1648_v34 }
 0x152   :  { %1497 = vmatprep.subr.bf16.mxu1 %v1649_v35 }
 0x153   :  { %1476 = vmatpush3.bf16.msra.mxu0 %v1650_v36 }
 0x154   :  { %1498 = vmatpush3.bf16.msra.mxu1 %v1651_v38  ;;  %1477 = vmatprep.subr.bf16.mxu0 %v1652_v39 }
 0x155   :  { %1499 = vmatprep.subr.bf16.mxu1 %v1653_v40 }
 0x157   :  { %1478 = vmatpush3.bf16.msra.mxu0 %v1654_v41 }
 0x158   :  { %1500 = vmatpush3.bf16.msra.mxu1 %v1655_v42  ;;  %1479 = vmatprep.subr.bf16.mxu0 %v1656_v43 }
 0x159   :  { %1501 = vmatprep.subr.bf16.mxu1 %v1657_v45 }
 0x15b   :  { %1480 = vmatpush3.bf16.msra.mxu0 %v1658_v52 }
 0x15c   :  { %1502 = vmatpush3.bf16.msra.mxu1 %v1659_v54  ;;  %1481 = vmatprep.subr.bf16.mxu0 %v1660_v55  ;;  %v1323_v54 = vrot.slane %v275_v53, %v1871_v51 }
 0x15d   :  { %1503 = vmatprep.subr.bf16.mxu1 %v1661_v56 }
 0x15f   :  { %1482 = vmatpush3.bf16.msra.mxu0 %v1662_v57  ;;  %v1338_v57 = vrot.slane %v1323_v54, %v1871_v51 }
 0x160   :  { %1504 = vmatpush3.bf16.msra.mxu1 %v1663_v58  ;;  %1483 = vmatprep.subr.bf16.mxu0 %v1664_v59 }
 0x161   :  { %1505 = vmatprep.subr.bf16.mxu1 %v1665_v60 }
 0x163   :  { %1484 = vmatpush3.bf16.msra.mxu0 %v1666_v61  ;;  %v1349_v61 = vrot.slane %v274_v11, %v287_v49 }
 0x164   :  { %1506 = vmatpush3.bf16.msra.mxu1 %v1667_v62  ;;  %1485 = vmatprep.subr.bf16.mxu0 %v1668_v63 }
 0x165   :  { %1507 = vmatprep.subr.bf16.mxu1 %v1669_v0 }
 0x167   :  { %1486 = vmatpush3.bf16.msra.mxu0 %v1670_v1 }
 0x168   :  { %1508 = vmatpush3.bf16.msra.mxu1 %v1671_v6  ;;  %1487 = vmatprep.subr.bf16.mxu0 %v1672_v7 }
 0x169   :  { %1509 = vmatprep.subr.bf16.mxu1 %v1673_v8 }
 0x16b   :  { %1488 = vmatpush3.bf16.msra.mxu0 %v1674_v9 }
 0x16c   :  { %1510 = vmatpush3.bf16.msra.mxu1 %v1675_v10 }
 0x16e   :  { %1230 = vmatmul.mubr.bf16.vlgmr.msra.gmra.mrb[12].mxu0 %v1897_v32 }
 0x16f   :  { %1270 = vmatmul.mubr.bf16.vlgmr.msra.gmra.mrb[12].mxu1 %v1899_v5  ;;  %v1290_v5 = vrot.slane %v275_v53, %v1863_v44 }
 0x171   :  { %v1305_v52 = vrot.slane %v1290_v5, %v1863_v44 }
 0x221   :  { %v1149_v14 = vpop.f32.mrb[8].mxu0 }
 0x222   :  { %v1150_v15 = vadd.f32 %v1149_v14, %v1838_v46  ;;  %v1190_v16 = vpop.f32.mrb[8].mxu1  ;;  %v1151_v18 = vpop.f32.mrb[9].mxu0 }
 0x223   :  { %v1152_v2 = vadd.f32 %v1151_v18, %v1842_v50  ;;  %v1192_v20 = vpop.f32.mrb[9].mxu1  ;;  %v1153_v22 = vpop.f32.mrb[10].mxu0 }
 0x224   :  { %v1191_v24 = vadd.f32 %v1190_v16, %v1150_v15  ;;  %v1194_v48 = vpop.f32.mrb[10].mxu1  ;;  %v1154_v3 = vpop.f32.mrb[11].mxu0 }
 0x225   :  { %v1193_v25 = vadd.f32 %v1192_v20, %v1152_v2  ;;  %v1195_v46 = vpop.f32.mrb[11].mxu1 }
 0x226   :  { %v1306_v26 = vadd.f32 %v1297_v17, %v1191_v24 }
 0x227   :  { %v1307_v28 = vadd.f32 %v1301_v21, %v1193_v25 }
 0x228   :  { %v1309_v30 = vmax.f32 %v1306_v26, 0.0 }
 0x229   :  { %v1310_v50 = vmax.f32 %v1307_v28, 0.0 }
 0x22a   :  { %v1339_v31 = vmul.f32 %v1330_v27, %v1309_v30 }
 0x22b   :  { %v1340_v4 = vmul.f32 %v1334_v29, %v1310_v50 }
 0x22d   :  { %v1342_v32 = vadd.f32 %v1340_v4, %v1339_v31 }
 0x241   :  { %v1489_v33 = vpop.f32.mrb[12].mxu0 }
 0x242   :  { %v1511_v34 = vpop.f32.mrb[12].mxu1  ;;  %v1490_v35 = vpop.f32.mrb[13].mxu0 }
 0x243   :  { %v1491_v36 = vadd.f32 %v1490_v35, %v1489_v33  ;;  %v1512_v38 = vpop.f32.mrb[13].mxu1  ;;  %v1492_v39 = vpop.f32.mrb[14].mxu0 }
 0x244   :  { %v1513_v40 = vadd.f32 %v1512_v38, %v1511_v34  ;;  %v1514_v41 = vpop.f32.mrb[14].mxu1  ;;  %v1493_v42 = vpop.f32.mrb[15].mxu0 }
 0x245   :  { %v1232_v43 = vadd.f32 %v1491_v36, %v1840_v47  ;;  %v1515_v45 = vpop.f32.mrb[15].mxu1 }
 0x247   :  { %v1272_v55 = vadd.f32 %v1513_v40, %v1232_v43 }
 0x249   :  { %v1308_v56 = vadd.f32 %v1305_v52, %v1272_v55 }
 0x24b   :  { %v1311_v58 = vmax.f32 %v1308_v56, 0.0 }
 0x24d   :  { %v1341_v59 = vmul.f32 %v1338_v57, %v1311_v58 }
 0x24f   :  { %v1343_v60 = vadd.f32 %v1342_v32, %v1341_v59 }
 0x251   :  { %1344 = vadd.xlane.f32.xlu0 %v1343_v60 }
 0x2de   :  { %v1345_v62 = vpop.xlane.xlu0 %1344 }
 0x2df   :  { %v1350_v63 = vadd.f32 %v1349_v61, %v1345_v62 }
 0x2e1   :  { %1352 = vst.msk [vmem:[%s1939_s6] sm:$0xff] %vm1351_vm4, %v1350_v63 }
 0x2e2   :  { %1357 = vsyncpa [#allocation3], 1 }
 0x2e3   :  { %1358 = vsyncpa [#allocation5], 1 }

</bundles_post_ra>
